<compile_context>
chip_gen: v7x
topology: tpu7x:2x2x1
jax: 0.10.0
libtpu: 0.0.40
codegen_flags: <defaults>
</compile_context>

<pallas_src>
import math

import jax
import jax.numpy as jnp
from jax import lax
from jax.experimental import pallas as pl
from jax.experimental.pallas import tpu as pltpu


# --------------------------------------------------------------------------
# Kernels
# --------------------------------------------------------------------------
def _lora_kernel_full_n(x_ref, dw_ref, uw_ref, o_ref):
    # x_ref : (tm, in_features)      tile of hidden_states, ORIGINAL dtype
    # dw_ref: (rank, in_features)    down.weight (native layout, resident)
    # uw_ref: (rank, out_features)   up.weight.T (resident)
    # o_ref : (tm, out_features)     output tile, ORIGINAL dtype
    x = x_ref[...].astype(dw_ref.dtype)              # cast in-kernel, no HBM copy
    # (tm, in) x (rank, in) contracted on `in` -> (tm, rank)
    h = lax.dot_general(x, dw_ref[...], (((1,), (1,)), ((), ())),
                        preferred_element_type=jnp.float32)
    y = jnp.dot(h.astype(uw_ref.dtype), uw_ref[...],
                preferred_element_type=jnp.float32)
    o_ref[...] = y.astype(o_ref.dtype)


def _lora_kernel_tiled_n(x_ref, dw_ref, uw_ref, o_ref, h_ref):
    # N-tiled fallback: h depends only on the row block i, so compute it once
    # (at j == 0) and reuse the VMEM-cached value for every N tile j.
    @pl.when(pl.program_id(1) == 0)
    def _():
        x = x_ref[...].astype(dw_ref.dtype)
        h_ref[...] = lax.dot_general(x, dw_ref[...], (((1,), (1,)), ((), ())),
                                     preferred_element_type=jnp.float32)

    y = jnp.dot(h_ref[...].astype(uw_ref.dtype), uw_ref[...],
                preferred_element_type=jnp.float32)
    o_ref[...] = y.astype(o_ref.dtype)


# --------------------------------------------------------------------------
# Weight preparation (one-time, OUTSIDE the per-call hot path)
# --------------------------------------------------------------------------
def prepare_lora_weights(down_w, up_w, compute_dtype=jnp.bfloat16):
    """down_w: (rank, in_features) is kept as-is (rank on sublanes);
    up_w: (out_features, rank) is transposed to (rank, out_features).

    compute_dtype defaults to bfloat16 (MXU-native on v5e/v6e/v7x; f32
    accumulation is preserved inside the kernel).  Pass compute_dtype=None to
    keep the module's weight dtype exactly (PyTorch 'cast x to weight dtype'
    semantics) at the cost of slower f32 MXU emulation.
    """
    dw = down_w
    uwt = up_w.T
    if compute_dtype is not None:
        dw = dw.astype(compute_dtype)
        uwt = uwt.astype(compute_dtype)
    return dw, uwt


# --------------------------------------------------------------------------
# Helpers
# --------------------------------------------------------------------------
def _round_up(x, m):
    return (x + m - 1) // m * m


def _padded_bytes(shape2d, dtype):
    """VMEM footprint of a 2-D buffer including (sublane, lane) tile padding."""
    r, c = shape2d
    bpe = jnp.dtype(dtype).itemsize
    sub = 8 * max(1, 4 // bpe)          # 8 rows f32, 16 bf16, 32 int8/fp8
    return _round_up(max(r, 1), sub) * _round_up(max(c, 1), 128) * bpe


def _physical_vmem_bytes():
    try:
        return int(pltpu.get_tpu_info().vmem_capacity_bytes)
    except Exception:
        return 64 * 1024 * 1024         # conservative (v7x per-core VMEM)


# --------------------------------------------------------------------------
# Forward
# --------------------------------------------------------------------------
def lora_linear_forward(hidden_states, dw, uwt, *, tm=None, tn=None,
                        vmem_budget_bytes=None):
    """Pallas LoRA forward.

    hidden_states: (..., in_features), any float dtype (orig_dtype)
    dw : (rank, in_features)       down.weight (native layout)
    uwt: (rank, out_features)      up.weight pre-transposed
    returns (..., out_features) in orig_dtype.
    """
    orig_dtype = hidden_states.dtype
    *lead, in_features = hidden_states.shape
    rank, in_f2 = dw.shape
    rank2, out_features = uwt.shape
    assert in_f2 == in_features and rank2 == rank

    M = math.prod(lead) if lead else 1
    x2 = hidden_states.reshape(M, in_features)

    x_bytes = jnp.dtype(orig_dtype).itemsize
    w_dtype = dw.dtype
    w_bytes = jnp.dtype(w_dtype).itemsize

    phys = _physical_vmem_bytes()
    if vmem_budget_bytes is None:
        # v5e/v6e: 128 MiB physical -> 64 MiB of buffers.  v7x: 64 MiB -> 32 MiB.
        vmem_budget_bytes = (64 << 20) if phys >= (96 << 20) else (32 << 20)
    if tm is None:
        tm = 1024 if phys >= (96 << 20) else 512

    def vmem_estimate(t, n):
        # Lane/sublane-padded sizes (rank pads to 128 lanes in intermediates,
        # to 8/16 sublanes in the weights).
        b = 2 * _padded_bytes((t, in_features), orig_dtype)      # x tile (dbl buf)
        b += 2 * _padded_bytes((t, n), orig_dtype)               # out tile (dbl buf)
        b += 2 * _padded_bytes((rank, in_features), w_dtype)     # down weight
        b += 2 * _padded_bytes((rank, n), w_dtype)               # up weight tile
        b += _padded_bytes((t, rank), jnp.float32)               # h
        b += _padded_bytes((t, n), jnp.float32)                  # f32 y before cast
        if orig_dtype != w_dtype:
            b += _padded_bytes((t, in_features), w_dtype)        # x cast temp
        return b

    # ---- row tile (tm) selection ------------------------------------------
    tm_eff = min(tm, M)
    if tm_eff < M:
        # Partial blocks require a sublane-aligned tile; block == full dim is
        # always legal when tm_eff == M.
        tm_eff = max(16, (tm_eff // 16) * 16)
    # v7x has 2 TensorCores; give the 'parallel' row axis >= 2 blocks when
    # there is enough work to split (harmless on single-core chips).
    if M >= 256 and pl.cdiv(M, tm_eff) < 2:
        tm_eff = max(16, _round_up(pl.cdiv(M, 2), 16))

    # ---- column tiling: keep full out_features resident when it fits -------
    if tn is None:
        tn_eff = out_features
        t_try = tm_eff
        while vmem_estimate(t_try, tn_eff) > vmem_budget_bytes and t_try > 128:
            t_try = max(128, (t_try // 2 // 16) * 16)
        if vmem_estimate(t_try, tn_eff) <= vmem_budget_bytes:
            tm_eff = t_try
        else:
            # Fall back to N tiling only for truly huge out_features.
            tn_eff = 2048
            while vmem_estimate(tm_eff, tn_eff) > vmem_budget_bytes and tn_eff > 256:
                tn_eff //= 2
            while vmem_estimate(tm_eff, tn_eff) > vmem_budget_bytes and tm_eff > 128:
                tm_eff = max(128, (tm_eff // 2 // 16) * 16)
    else:
        tn_eff = min(tn, out_features)
        assert tn_eff == out_features or tn_eff % 128 == 0, \
            "tn must be a multiple of 128 or equal out_features"

    tiled_n = tn_eff < out_features

    # ---- grid / specs -------------------------------------------------------
    if not tiled_n:
        grid = (pl.cdiv(M, tm_eff),)
        in_specs = [
            pl.BlockSpec((tm_eff, in_features), lambda i: (i, 0)),
            pl.BlockSpec((rank, in_features), lambda i: (0, 0)),
            pl.BlockSpec((rank, out_features), lambda i: (0, 0)),
        ]
        out_spec = pl.BlockSpec((tm_eff, out_features), lambda i: (i, 0))
        kernel = _lora_kernel_full_n
        scratch = []
        dim_sem = ("parallel",)
    else:
        grid = (pl.cdiv(M, tm_eff), pl.cdiv(out_features, tn_eff))
        in_specs = [
            pl.BlockSpec((tm_eff, in_features), lambda i, j: (i, 0)),
            pl.BlockSpec((rank, in_features), lambda i, j: (0, 0)),
            pl.BlockSpec((rank, tn_eff), lambda i, j: (0, j)),
        ]
        out_spec = pl.BlockSpec((tm_eff, tn_eff), lambda i, j: (i, j))
        kernel = _lora_kernel_tiled_n
        scratch = [pltpu.VMEM((tm_eff, rank), jnp.float32)]
        # j reuses the h scratch within a row block -> keep it sequential.
        dim_sem = ("parallel", "arbitrary")

    est = vmem_estimate(tm_eff, tn_eff)
    vmem_limit = int(min(phys * 3 // 4, max(vmem_budget_bytes, est + (8 << 20))))
    vmem_limit = max(vmem_limit, 16 << 20)

    weight_bytes = (rank * in_features + rank * out_features) * w_bytes
    cost = pl.CostEstimate(
        flops=2 * M * rank * (in_features + out_features),
        transcendentals=0,
        bytes_accessed=M * (in_features + out_features) * x_bytes + weight_bytes,
    )

    out2 = pl.pallas_call(
        kernel,
        out_shape=jax.ShapeDtypeStruct((M, out_features), orig_dtype),
        grid=grid,
        in_specs=in_specs,
        out_specs=out_spec,
        scratch_shapes=scratch,
        compiler_params=pltpu.CompilerParams(
            dimension_semantics=dim_sem,
            vmem_limit_bytes=vmem_limit,
        ),
        cost_estimate=cost,
    )(x2, dw, uwt)

    return out2.reshape(*lead, out_features)


# --------------------------------------------------------------------------
# Self-test
# --------------------------------------------------------------------------
if __name__ == "__main__":
    batch, seq = 2, 8
    in_features, out_features, rank = 32, 32, 4

    key = jax.random.PRNGKey(0)
    kx, kd, ku, ku2 = jax.random.split(key, 4)

    # hidden_states in bf16 (orig_dtype), module weights in f32.
    x = jax.random.normal(kx, (batch, seq, in_features),
                          dtype=jnp.float32).astype(jnp.bfloat16)

    # Deterministic init matching LoRALinearLayer.__init__:
    #   down.weight ~ N(0, std=1/rank), up.weight = 0
    down_w = jax.random.normal(kd, (rank, in_features), dtype=jnp.float32) * (1.0 / rank)
    up_w_zero = jnp.zeros((out_features, rank), dtype=jnp.float32)
    up_w = jax.random.normal(ku, (out_features, rank), dtype=jnp.float32) * 0.1

    def ref(xh, dw_, uw_):
        h = xh.astype(jnp.float32).reshape(-1, xh.shape[-1])
        y = (h @ dw_.astype(jnp.float32).T) @ uw_.astype(jnp.float32).T
        return y.reshape(xh.shape[:-1] + (uw_.shape[0],)).astype(xh.dtype)

    def close(a, b, tol):
        return bool(jnp.allclose(a.astype(jnp.float32), b.astype(jnp.float32),
                                 atol=tol, rtol=tol))

    ok = True

    # (a) Faithful module init (up == 0): output must be exactly zero.
    dwp, uwp = prepare_lora_weights(down_w, up_w_zero)
    got = jax.block_until_ready(lora_linear_forward(x, dwp, uwp))
    ok &= (got.shape == (batch, seq, out_features)) and (got.dtype == x.dtype)
    ok &= close(got, jnp.zeros_like(got), 1e-6)

    # (b) Non-zero up weight, default bf16 compute path (f32 accumulation).
    dwp, uwp = prepare_lora_weights(down_w, up_w)
    got = jax.block_until_ready(lora_linear_forward(x, dwp, uwp))
    ok &= close(got, ref(x, down_w.astype(jnp.bfloat16), up_w.astype(jnp.bfloat16)), 5e-2)

    # (c) Exact module-dtype (f32 weights) compatibility path.
    dwp32, uwp32 = prepare_lora_weights(down_w, up_w, compute_dtype=None)
    got = jax.block_until_ready(lora_linear_forward(x, dwp32, uwp32))
    ok &= close(got, ref(x, down_w, up_w), 3e-2)

    # (d) Ragged leading dims: exercises the partial boundary block
    #     (no host-side pad / slice).
    x_tail = jax.random.normal(kx, (3, 5, in_features),
                               dtype=jnp.float32).astype(jnp.bfloat16)
    got = jax.block_until_ready(lora_linear_forward(x_tail, dwp, uwp))
    ok &= (got.shape == (3, 5, out_features)) and (got.dtype == x_tail.dtype)
    ok &= close(got, ref(x_tail, down_w.astype(jnp.bfloat16), up_w.astype(jnp.bfloat16)), 5e-2)

    # (e) Forced N-tiling fallback (h cached in VMEM scratch across j tiles).
    out_big = 256
    up_big = jax.random.normal(ku2, (out_big, rank), dtype=jnp.float32) * 0.1
    dwp, uwp_big = prepare_lora_weights(down_w, up_big)
    got = jax.block_until_ready(lora_linear_forward(x, dwp, uwp_big, tn=128))
    ok &= (got.shape == (batch, seq, out_big)) and (got.dtype == x.dtype)
    ok &= close(got, ref(x, down_w.astype(jnp.bfloat16), up_big.astype(jnp.bfloat16)), 5e-2)

    if ok:
        print("KERNEL_OK")
</pallas_src>

<mosaic_0001>
module attributes {stable_mosaic.version = 11 : i64} {
  func.func @_lora_kernel_full_n(%arg0: i32, %arg1: memref<16x32xbf16, #tpu.memory_space<vmem>>, %arg2: memref<4x32xbf16, #tpu.memory_space<vmem>>, %arg3: memref<4x32xbf16, #tpu.memory_space<vmem>>, %arg4: memref<16x32xbf16, #tpu.memory_space<vmem>>) attributes {dimension_semantics = [#tpu.dimension_semantics<parallel>], iteration_bounds = array<i64: 1>, scalar_prefetch = 0 : i64, scratch_operands = 0 : i64, tpu.core_type = #tpu.core_type<tc>, window_params = [{transform_indices = @transform_0, window_bounds = array<i64: 16, 32>}, {pipeline_mode = #tpu.pipeline_mode<synchronous>, transform_indices = @transform_1, window_bounds = array<i64: 4, 32>}, {pipeline_mode = #tpu.pipeline_mode<synchronous>, transform_indices = @transform_2, window_bounds = array<i64: 4, 32>}, {transform_indices = @transform_3, window_bounds = array<i64: 16, 32>}]} {
    %c0 = arith.constant 0 : index
    %c0_0 = arith.constant 0 : index
    %0 = vector.load %arg1[%c0, %c0_0] : memref<16x32xbf16, #tpu.memory_space<vmem>>, vector<16x32xbf16>
    %c0_1 = arith.constant 0 : index
    %c0_2 = arith.constant 0 : index
    %1 = vector.load %arg2[%c0_1, %c0_2] : memref<4x32xbf16, #tpu.memory_space<vmem>>, vector<4x32xbf16>
    %cst = arith.constant dense<0.000000e+00> : vector<16x4xf32>
    %2 = tpu.matmul %0, %1, %cst {dimension_numbers = #tpu.dot_dimension_numbers<[1], [1], [0], [0], [0, 0, 1, 0], [], []>} : vector<16x32xbf16>, vector<4x32xbf16>, vector<16x4xf32> -> vector<16x4xf32>
    %3 = arith.truncf %2 : vector<16x4xf32> to vector<16x4xbf16>
    %c0_3 = arith.constant 0 : index
    %c0_4 = arith.constant 0 : index
    %4 = vector.load %arg3[%c0_3, %c0_4] : memref<4x32xbf16, #tpu.memory_space<vmem>>, vector<4x32xbf16>
    %cst_5 = arith.constant dense<0.000000e+00> : vector<16x32xf32>
    %5 = tpu.matmul %3, %4, %cst_5 {dimension_numbers = #tpu.dot_dimension_numbers<[1], [0], [0], [1], [0, 0, 1, 1], [], []>} : vector<16x4xbf16>, vector<4x32xbf16>, vector<16x32xf32> -> vector<16x32xf32>
    %6 = arith.truncf %5 : vector<16x32xf32> to vector<16x32xbf16>
    %c0_6 = arith.constant 0 : index
    %c0_7 = arith.constant 0 : index
    %7 = vector.load %arg4[%c0_6, %c0_7] : memref<16x32xbf16, #tpu.memory_space<vmem>>, vector<16x32xbf16>
    tpu.vector_store %arg4[%c0_6, %c0_7], %6 {strides = array<i32>} : memref<16x32xbf16, #tpu.memory_space<vmem>>, vector<16x32xbf16>,
    return
  }
  func.func @transform_0(%arg0: i32) -> (i32, i32) {
    %c0_i32 = arith.constant 0 : i32
    %c0_i32_0 = arith.constant 0 : i32
    return %arg0, %c0_i32 : i32, i32
  }
  func.func @transform_1(%arg0: i32) -> (i32, i32) {
    %c0_i32 = arith.constant 0 : i32
    %c0_i32_0 = arith.constant 0 : i32
    %c0_i32_1 = arith.constant 0 : i32
    return %c0_i32, %c0_i32_0 : i32, i32
  }
  func.func @transform_2(%arg0: i32) -> (i32, i32) {
    %c0_i32 = arith.constant 0 : i32
    %c0_i32_0 = arith.constant 0 : i32
    %c0_i32_1 = arith.constant 0 : i32
    return %c0_i32, %c0_i32_0 : i32, i32
  }
  func.func @transform_3(%arg0: i32) -> (i32, i32) {
    %c0_i32 = arith.constant 0 : i32
    %c0_i32_0 = arith.constant 0 : i32
    return %arg0, %c0_i32 : i32, i32
  }
}

</mosaic_0001>

<bundles_post_ra>
// kernel: tpu_custom_call.1
= control target key start
LH: loop header
LB: loop body
LE: loop exit
PB: predicated region body
PF: predicated region fallthrough
CT: control target
= control target key end

     0   :  { %8 = vsyncpa [#allocation3], 0  ;;  %s305_s0 = inlined_call_operand.hbm [shape: bf16[16,32], index: 0, kind: input, shape index: {}]   ;;  %s306_s1 = inlined_call_operand.vmem [shape: bf16[4,32], index: 1, kind: input, shape index: {}]   ;;  %s307_s2 = inlined_call_operand.vmem [shape: bf16[4,32], index: 2, kind: input, shape index: {}]   ;;  %s308_s3 = inlined_call_operand.hbm [shape: bf16[16,32], index: 3, kind: output, shape index: {}]  }
   0x1   :  { %9 = vsyncpa [#allocation4], 0  ;;  %s243_s12 = smov [#allocation2]   ;;  %s195_s16 = scalar_lea.hbm %s305_s0, 128 }
   0x2   :  { %s15_s13 = sshll.u32 %s243_s12, 4  ;;  %p196_p0 = scmp.ne.s32.totalorder %s305_s0, %s195_s16  ;;  %s16_s13 = int_to_ptr.vmem [resolvable:$true] %s15_s13 }
   0x3   :  { %p199_p1 = scmp.lt.u32.totalorder %s195_s16, %s305_s0 }
   0x5   :  { %p201_p2 = pnand %p199_p1, %p196_p0 }
   0x7   :  { %204 = shalt.err (!%p201_p2)
}
   0x8   :  { %s205_s21 = scalar_lea.vmem %s16_s13, 128  ;;  %p210_p4 = scmp.lt.s32.totalorder %s16_s13, %s16_s13 }
   0x9   :  { %p206_p3 = scmp.ne.s32.totalorder %s16_s13, %s205_s21  ;;  %p211_p5 = scmp.lt.s32.totalorder %s205_s21, %s205_s21 }
   0xb   :  { %p212_p6 = por %p211_p5, %p210_p4 }
   0xd   :  { %p213_p7 = pnand %p212_p6, %p206_p3 }
   0xf   :  { %216 = shalt.err (!%p213_p7)
}
  0x10   :  { %s244_s22 = smov 64   ;;  %s245_s23 = smov 4  }
  0x11   :  { %21 = dma.hbm_to_vmem [thread:$0]  %s305_s0, 128, %s16_s13, [#allocation3], %s244_s22, %s244_s22, %s245_s23  }
  0x12   :  { %239 = dma.done.wait [#allocation3], 128  }
  0x13   :  { %240 = vsyncadd [#allocation3], 4294967168  ;;  %v246_v0 = vmov 0.0   ;;  %vm247_vm0 = vmmov 0   ;;  %vm38_vm1 = vcmask 261120   ;;  %v194_v3 = vld [vmem:[#allocation2] sm:$0xff]  }
  0x14   :  { %176 = vmatprep.subr.bf16.mxu0 %v246_v0  ;;  %178 = vmatprep.mubr.msk.bf16.mxu0 %vm247_vm0, %v246_v0  ;;  %v32_v1 = vld [vmem:[%s306_s1] sm:$0x3]  ;;  %vm92_vm2 = vcmask 1041408   ;;  %vm88_vm3 = vcmask 31744   ;;  %vm145_vm4 = vcmask 257024   ;;  %s248_s0 = smov [#allocation5]  }
  0x15   :  { %182 = vmatprep.subr.bf16.mxu1 %v246_v0  ;;  %184 = vmatprep.mubr.msk.bf16.mxu1 %vm247_vm0, %v246_v0  ;;  %v43_v2 = vsel %vm38_vm1, %v32_v1, 0  ;;  %v87_v4 = vld [vmem:[%s307_s2] sm:$0x3]  ;;  %s153_s1 = sshll.u32 %s248_s0, 4  ;;  %s154_s1 = int_to_ptr.vmem [resolvable:$true] %s153_s1 }
  0x16   :  { %177 = vmatpush3.bf16.xpose.msra.mxu0 %v43_v2  ;;  %v94_v5 = vsel %vm92_vm2, %v87_v4, 0  ;;  %s217_s2 = scalar_lea.vmem %s154_s1, 128  ;;  %p222_p9 = scmp.lt.s32.totalorder %s154_s1, %s154_s1 }
  0x17   :  { %183 = vmatpush3.bf16.msra.mxu1 %v94_v5  ;;  %p218_p8 = scmp.ne.s32.totalorder %s154_s1, %s217_s2  ;;  %p223_p10 = scmp.lt.s32.totalorder %s217_s2, %s217_s2 }
  0x19   :  { %p224_p11 = por %p223_p10, %p222_p9 }
  0x1b   :  { %p225_p12 = pnand %p224_p11, %p218_p8 }
  0x1d   :  { %179 = vmatmul.mubr.msk.bf16.vlgmr.msra.gmra.mrb[0].mxu0 %vm38_vm1, %v194_v3 }
  0xf0   :  { %v79_v6 = vpop.f32.mrb[0].mxu0 }
  0xf1   :  { %v180_v7 = vpop.f32.mrb[1].mxu0 }
  0xf2   :  { %v82_v8 = vpop.f32.mrb[2].mxu0 }
  0xf3   :  { %v86_v9 = vpack.c.bf16 %v82_v8, %v79_v6  ;;  %v181_v10 = vpop.f32.mrb[3].mxu0 }
  0xf5   :  { %185 = vmatmul.mubr.msk.bf16.vlgmr.msra.gmra.mrb[0].mxu1 %vm88_vm3, %v86_v9 }
 0x1c8   :  { %v130_v11 = vpop.f32.mrb[0].mxu1 }
 0x1c9   :  { %v170_v12 = vpack.c.bf16 %v130_v11, %v130_v11  ;;  %v186_v13 = vpop.f32.mrb[1].mxu1 }
 0x1ca   :  { %v133_v14 = vpop.f32.mrb[2].mxu1 }
 0x1cb   :  { %v171_v15 = vpack.c.bf16 %v133_v14, %v133_v14  ;;  %v187_v16 = vpop.f32.mrb[3].mxu1  ;;  %146 = vst.msk [vmem:[#allocation5] sm:$0xf] %vm145_vm4, %v170_v12 }
 0x1cd   :  { %147 = vst.msk [vmem:[#allocation5 + $0x4] sm:$0xf] %vm145_vm4, %v171_v15 }
 0x1ce   :  { %228 = shalt.err (!%p225_p12)
}
 0x1cf   :  { %s229_s5 = scalar_lea.hbm %s308_s3, 128 }
 0x1d0   :  { %p230_p13 = scmp.ne.s32.totalorder %s308_s3, %s229_s5  ;;  %p233_p0 = scmp.lt.u32.totalorder %s229_s5, %s308_s3 }
 0x1d2   :  { %p235_p1 = pnand %p233_p0, %p230_p13 }
 0x1d4   :  { %238 = shalt.err (!%p235_p1)
}
 0x1d5   :  { %159 = dma.vmem_to_hbm [thread:$0]  %s154_s1, 128, %s308_s3, [#allocation4], %s244_s22, %s244_s22, %s245_s23  }
 0x1d6   :  { %241 = dma.done.wait [#allocation4], 128  }
 0x1d7   :  { %242 = vsyncadd [#allocation4], 4294967168 }
 0x1d8   :  { %163 = vsyncpa [#allocation3], 1 }
 0x1d9   :  { %164 = vsyncpa [#allocation4], 1 }

</bundles_post_ra>
